<compile_context>
chip_gen: v7x
topology: tpu7x:2x2x1
jax: 0.10.0
libtpu: 0.0.40
codegen_flags: <defaults>
</compile_context>

<pallas_src>
import jax
import jax.numpy as jnp
from jax.experimental import pallas as pl
from jax.experimental.pallas import tpu as pltpu

EPS = 1e-12
_OUT_SUB, _OUT_LANE = 8, 128  # one (8,128) f32 tile of partial sums per row tile


def _scalar_to_tile(value):
    """Place a scalar at [0, 0] of an (8, 128) tile, zeros elsewhere."""
    sub = jax.lax.broadcasted_iota(jnp.int32, (_OUT_SUB, _OUT_LANE), 0)
    lane = jax.lax.broadcasted_iota(jnp.int32, (_OUT_SUB, _OUT_LANE), 1)
    return jnp.where((sub == 0) & (lane == 0), value, 0.0).astype(jnp.float32)


def _fused_kernel(mat_ref, preds_ref, b_ref, res_ref, bss_ref):
    # Single grid axis over row tiles: full-row matvec + residual in one step.
    ax = jnp.dot(mat_ref[...], preds_ref[...],
                 preferred_element_type=jnp.float32)          # (tm, 1)
    b_tile = b_ref[...].astype(jnp.float32)
    residual = b_tile - ax
    res_ref[...] = _scalar_to_tile(jnp.sum(residual * residual))
    bss_ref[...] = _scalar_to_tile(jnp.sum(b_tile * b_tile))


def _tiled_kernel(mat_ref, preds_ref, b_ref, res_ref, bss_ref, acc_ref):
    # Grid: (row tiles [parallel], K tiles [arbitrary, reduction]).
    k = pl.program_id(1)

    @pl.when(k == 0)
    def _():
        acc_ref[...] = jnp.zeros_like(acc_ref)

    acc_ref[...] += jnp.dot(mat_ref[...], preds_ref[...],
                            preferred_element_type=jnp.float32)

    @pl.when(k == pl.num_programs(1) - 1)
    def _():
        b_tile = b_ref[...].astype(jnp.float32)
        residual = b_tile - acc_ref[...]
        res_ref[...] = _scalar_to_tile(jnp.sum(residual * residual))
        bss_ref[...] = _scalar_to_tile(jnp.sum(b_tile * b_tile))


def _pick_tile(n, cap, unit):
    """Largest tile <= cap that divides n; full n if n <= cap."""
    if n <= cap:
        return n
    t = (cap // unit) * unit
    while t >= unit and n % t != 0:
        t -= unit
    if t < unit or n % t != 0:
        raise ValueError(f"cannot tile dimension {n} (unit {unit}, cap {cap})")
    return t


def residual_loss(preds, target_b, matrix, batch_map=None, *,
                  tm=None, tk=None, vmem_budget_bytes=24 << 20):
    """Pallas implementation of ResidualLoss.forward.

    preds:    f32 [N]
    target_b: f32 [N]
    matrix:   f32 [N, N]  (dense stand-in for the torch sparse matrix)
    batch_map: unused (kept for signature parity with the torch module)
    """
    n = preds.shape[0]
    assert matrix.shape == (n, n)

    # Tile selection: big row tiles; tk = N (fused path) when the double-
    # buffered (tm, tk) f32 slab fits the VMEM budget (conservative for v7x).
    if tm is None:
        tm = _pick_tile(n, 512, 8)
    if tk is None:
        tk_cap = max(vmem_budget_bytes // (2 * tm * 4), 128)
        tk = _pick_tile(n, tk_cap, 128)
    assert n % tm == 0 and n % tk == 0, (n, tm, tk)

    preds_col = preds.reshape(n, 1).astype(jnp.float32)
    b_col = target_b.reshape(n, 1).astype(jnp.float32)
    mat = matrix.astype(jnp.float32)

    n_row_tiles = n // tm
    out_shape = (
        jax.ShapeDtypeStruct((n_row_tiles * _OUT_SUB, _OUT_LANE), jnp.float32),
        jax.ShapeDtypeStruct((n_row_tiles * _OUT_SUB, _OUT_LANE), jnp.float32),
    )

    # Scoped-VMEM: double-buffered matrix tile dominates; add headroom.
    vmem_bytes = (2 * tm * tk * 4          # matrix tile (double buffered)
                  + 2 * (tk + tm) * 4      # preds / target_b column tiles
                  + 4 * _OUT_SUB * _OUT_LANE * 4
                  + tm * 4)                # accumulator scratch (tiled path)
    vmem_limit = min(max(vmem_bytes + (2 << 20), 16 << 20), 100 << 20)

    if tk == n:
        # Fused path: one grid step per row tile, no reduction axis.
        grid_spec = pltpu.PrefetchScalarGridSpec(
            num_scalar_prefetch=0,
            grid=(n_row_tiles,),
            in_specs=[
                pl.BlockSpec((tm, n), lambda i: (i, 0)),   # matrix row slab
                pl.BlockSpec((n, 1), lambda i: (0, 0)),    # full preds column
                pl.BlockSpec((tm, 1), lambda i: (i, 0)),   # target_b tile
            ],
            out_specs=[
                pl.BlockSpec((_OUT_SUB, _OUT_LANE), lambda i: (i, 0)),
                pl.BlockSpec((_OUT_SUB, _OUT_LANE), lambda i: (i, 0)),
            ],
        )
        kernel = _fused_kernel
        dim_sem = ("parallel",)
    else:
        # K-tiled path for very large N: accumulate the matvec over K tiles.
        grid_spec = pltpu.PrefetchScalarGridSpec(
            num_scalar_prefetch=0,
            grid=(n_row_tiles, n // tk),
            in_specs=[
                pl.BlockSpec((tm, tk), lambda i, k: (i, k)),  # matrix tile
                pl.BlockSpec((tk, 1), lambda i, k: (k, 0)),   # preds tile
                pl.BlockSpec((tm, 1), lambda i, k: (i, 0)),   # target_b tile
            ],
            out_specs=[
                pl.BlockSpec((_OUT_SUB, _OUT_LANE), lambda i, k: (i, 0)),
                pl.BlockSpec((_OUT_SUB, _OUT_LANE), lambda i, k: (i, 0)),
            ],
            scratch_shapes=[pltpu.VMEM((tm, 1), jnp.float32)],
        )
        kernel = _tiled_kernel
        dim_sem = ("parallel", "arbitrary")

    res_partials, b_partials = pl.pallas_call(
        kernel,
        out_shape=out_shape,
        grid_spec=grid_spec,
        compiler_params=pltpu.CompilerParams(
            dimension_semantics=dim_sem,
            vmem_limit_bytes=vmem_limit),
    )(mat, preds_col, b_col)

    # Tiny scalar epilogue in plain JAX (partials are zero except lane [0,0]
    # of each row tile's (8,128) block, so a plain sum is exact).
    res_ss = jnp.sum(res_partials)
    b_ss = jnp.sum(b_partials)
    return jnp.sqrt(res_ss) / (jnp.sqrt(b_ss) + EPS)   # .mean() of a scalar is a no-op


def _reference(preds, target_b, matrix):
    ax = matrix @ preds
    residual = target_b - ax
    return jnp.linalg.norm(residual) / (jnp.linalg.norm(target_b) + EPS)


if __name__ == "__main__":
    key = jax.random.PRNGKey(0)
    k1, k2, k3, k4 = jax.random.split(key, 4)

    N = 256
    # Deterministic "sparse" system matrix: dense storage with ~90% zeros.
    dense = jax.random.normal(k1, (N, N), dtype=jnp.float32)
    mask = (jax.random.uniform(k2, (N, N)) < 0.1).astype(jnp.float32)
    matrix = dense * mask + jnp.eye(N, dtype=jnp.float32)  # keep it well-posed

    preds = jax.random.normal(k3, (N,), dtype=jnp.float32)
    target_b = jax.random.normal(k4, (N,), dtype=jnp.float32)
    batch_map = jnp.zeros((N,), dtype=jnp.int32)            # unused, as in torch

    ref = _reference(preds, target_b, matrix)

    # Default (fused, no-K-axis) path.
    loss = jax.block_until_ready(residual_loss(preds, target_b, matrix, batch_map))
    assert jnp.allclose(loss, ref, rtol=3e-5, atol=1e-6), (loss, ref)

    # Force small tiles to also exercise the K-tiled (reduction) path.
    loss_tiled = jax.block_until_ready(
        residual_loss(preds, target_b, matrix, batch_map, tm=64, tk=128))
    assert jnp.allclose(loss_tiled, ref, rtol=3e-5, atol=1e-6), (loss_tiled, ref)

    print("KERNEL_OK")
</pallas_src>

<mosaic_0001>
module attributes {stable_mosaic.version = 11 : i64} {
  func.func @_fused_kernel(%arg0: i32, %arg1: memref<256x256xf32, #tpu.memory_space<vmem>>, %arg2: memref<256x1xf32, #tpu.memory_space<vmem>>, %arg3: memref<256x1xf32, #tpu.memory_space<vmem>>, %arg4: memref<8x128xf32, #tpu.memory_space<vmem>>, %arg5: memref<8x128xf32, #tpu.memory_space<vmem>>) attributes {dimension_semantics = [#tpu.dimension_semantics<parallel>], iteration_bounds = array<i64: 1>, scalar_prefetch = 0 : i64, scratch_operands = 0 : i64, tpu.core_type = #tpu.core_type<tc>, window_params = [{transform_indices = @transform_0, window_bounds = array<i64: 256, 256>}, {pipeline_mode = #tpu.pipeline_mode<synchronous>, transform_indices = @transform_1, window_bounds = array<i64: 256, 1>}, {transform_indices = @transform_2, window_bounds = array<i64: 256, 1>}, {transform_indices = @transform_3, window_bounds = array<i64: 8, 128>}, {transform_indices = @transform_4, window_bounds = array<i64: 8, 128>}]} {
    %c0 = arith.constant 0 : index
    %c0_0 = arith.constant 0 : index
    %0 = vector.load %arg1[%c0, %c0_0] : memref<256x256xf32, #tpu.memory_space<vmem>>, vector<256x256xf32>
    %c0_1 = arith.constant 0 : index
    %c0_2 = arith.constant 0 : index
    %1 = vector.load %arg2[%c0_1, %c0_2] : memref<256x1xf32, #tpu.memory_space<vmem>>, vector<256x1xf32>
    %cst = arith.constant dense<0.000000e+00> : vector<256x1xf32>
    %2 = tpu.matmul %0, %1, %cst {dimension_numbers = #tpu.dot_dimension_numbers<[1], [0], [0], [1], [0, 0, 1, 1], [], []>} : vector<256x256xf32>, vector<256x1xf32>, vector<256x1xf32> -> vector<256x1xf32>
    %c0_3 = arith.constant 0 : index
    %c0_4 = arith.constant 0 : index
    %3 = vector.load %arg3[%c0_3, %c0_4] : memref<256x1xf32, #tpu.memory_space<vmem>>, vector<256x1xf32>
    %4 = arith.subf %3, %2 : vector<256x1xf32>
    %5 = arith.mulf %4, %4 : vector<256x1xf32>
    %6 = vector.shape_cast %5 : vector<256x1xf32> to vector<1x256x1xf32>
    %cst_5 = arith.constant dense<0.000000e+00> : vector<1xf32>
    %7 = vector.multi_reduction <add>, %6, %cst_5 [1, 2] : vector<1x256x1xf32> to vector<1xf32>
    %8 = vector.shape_cast %7 : vector<1xf32> to vector<1x1x1xf32>
    %9 = vector.extract %8[0, 0, 0] : f32 from vector<1x1x1xf32>
    %10 = tpu.iota {dimensions = array<i32: 0>} : vector<8x128xi32>
    %11 = tpu.iota {dimensions = array<i32: 1>} : vector<8x128xi32>
    %c0_i32 = arith.constant 0 : i32
    %12 = vector.broadcast %c0_i32 : i32 to vector<8x128xi32>
    %13 = arith.cmpi eq, %10, %12 : vector<8x128xi32>
    %c0_i32_6 = arith.constant 0 : i32
    %14 = vector.broadcast %c0_i32_6 : i32 to vector<8x128xi32>
    %15 = arith.cmpi eq, %11, %14 : vector<8x128xi32>
    %16 = arith.andi %13, %15 : vector<8x128xi1>
    %cst_7 = arith.constant 0.000000e+00 : f32
    %17 = vector.broadcast %9 : f32 to vector<8x128xf32>
    %18 = vector.broadcast %cst_7 : f32 to vector<8x128xf32>
    %19 = arith.select %16, %17, %18 : vector<8x128xi1>, vector<8x128xf32>
    %c0_8 = arith.constant 0 : index
    %c0_9 = arith.constant 0 : index
    %20 = vector.load %arg4[%c0_8, %c0_9] : memref<8x128xf32, #tpu.memory_space<vmem>>, vector<8x128xf32>
    tpu.vector_store %arg4[%c0_8, %c0_9], %19 {strides = array<i32>} : memref<8x128xf32, #tpu.memory_space<vmem>>, vector<8x128xf32>,
    %21 = arith.mulf %3, %3 : vector<256x1xf32>
    %22 = vector.shape_cast %21 : vector<256x1xf32> to vector<1x256x1xf32>
    %cst_10 = arith.constant dense<0.000000e+00> : vector<1xf32>
    %23 = vector.multi_reduction <add>, %22, %cst_10 [1, 2] : vector<1x256x1xf32> to vector<1xf32>
    %24 = vector.shape_cast %23 : vector<1xf32> to vector<1x1x1xf32>
    %25 = vector.extract %24[0, 0, 0] : f32 from vector<1x1x1xf32>
    %26 = tpu.iota {dimensions = array<i32: 0>} : vector<8x128xi32>
    %27 = tpu.iota {dimensions = array<i32: 1>} : vector<8x128xi32>
    %c0_i32_11 = arith.constant 0 : i32
    %28 = vector.broadcast %c0_i32_11 : i32 to vector<8x128xi32>
    %29 = arith.cmpi eq, %26, %28 : vector<8x128xi32>
    %c0_i32_12 = arith.constant 0 : i32
    %30 = vector.broadcast %c0_i32_12 : i32 to vector<8x128xi32>
    %31 = arith.cmpi eq, %27, %30 : vector<8x128xi32>
    %32 = arith.andi %29, %31 : vector<8x128xi1>
    %cst_13 = arith.constant 0.000000e+00 : f32
    %33 = vector.broadcast %25 : f32 to vector<8x128xf32>
    %34 = vector.broadcast %cst_13 : f32 to vector<8x128xf32>
    %35 = arith.select %32, %33, %34 : vector<8x128xi1>, vector<8x128xf32>
    %c0_14 = arith.constant 0 : index
    %c0_15 = arith.constant 0 : index
    %36 = vector.load %arg5[%c0_14, %c0_15] : memref<8x128xf32, #tpu.memory_space<vmem>>, vector<8x128xf32>
    tpu.vector_store %arg5[%c0_14, %c0_15], %35 {strides = array<i32>} : memref<8x128xf32, #tpu.memory_space<vmem>>, vector<8x128xf32>,
    return
  }
  func.func @transform_0(%arg0: i32) -> (i32, i32) {
    %c0_i32 = arith.constant 0 : i32
    %c0_i32_0 = arith.constant 0 : i32
    return %arg0, %c0_i32 : i32, i32
  }
  func.func @transform_1(%arg0: i32) -> (i32, i32) {
    %c0_i32 = arith.constant 0 : i32
    %c0_i32_0 = arith.constant 0 : i32
    %c0_i32_1 = arith.constant 0 : i32
    return %c0_i32, %c0_i32_0 : i32, i32
  }
  func.func @transform_2(%arg0: i32) -> (i32, i32) {
    %c0_i32 = arith.constant 0 : i32
    %c0_i32_0 = arith.constant 0 : i32
    return %arg0, %c0_i32 : i32, i32
  }
  func.func @transform_3(%arg0: i32) -> (i32, i32) {
    %c0_i32 = arith.constant 0 : i32
    %c0_i32_0 = arith.constant 0 : i32
    return %arg0, %c0_i32 : i32, i32
  }
  func.func @transform_4(%arg0: i32) -> (i32, i32) {
    %c0_i32 = arith.constant 0 : i32
    %c0_i32_0 = arith.constant 0 : i32
    return %arg0, %c0_i32 : i32, i32
  }
}

</mosaic_0001>

<bundles_post_ra>
// kernel: tpu_custom_call.1
= control target key start
LH: loop header
LB: loop body
LE: loop exit
PB: predicated region body
PF: predicated region fallthrough
CT: control target
= control target key end

     0   :  { %10 = vsyncpa [#allocation3], 0  ;;  %v788_v3 = vmov 0.0|0.0   ;;  %s1463_s0 = inlined_call_operand.vmem [shape: f32[256,256], index: 0, kind: input, shape index: {}]   ;;  %s1464_s1 = inlined_call_operand.vmem [shape: f32[256,1], index: 1, kind: input, shape index: {}]   ;;  %s1465_s2 = inlined_call_operand.vmem [shape: f32[256,1], index: 2, kind: input, shape index: {}]   ;;  %s1466_s3 = inlined_call_operand.hbm [shape: f32[8,128], index: 3, kind: output, shape index: {0}]   ;;  %s1467_s4 = inlined_call_operand.hbm [shape: f32[8,128], index: 4, kind: output, shape index: {1}]  }
   0x1   :  { %v82_v0 = vld [vmem:[%s1464_s1] sm:$0xff]  ;;  %v83_v1 = vld [vmem:[%s1464_s1 + $0x8] sm:$0xff]  ;;  %v84_v2 = vld [vmem:[%s1464_s1 + $0x10] sm:$0xff]  ;;  %653 = vmatprep.subr.bf16.mxu0 %v788_v3  ;;  %701 = vmatprep.subr.bf16.mxu1 %v788_v3 }
   0x2   :  { %v654_v4 = vpack.c.bf16 %v83_v1, %v82_v0  ;;  %v85_v5 = vld [vmem:[%s1464_s1 + $0x18] sm:$0xff]  ;;  %v86_v7 = vld [vmem:[%s1464_s1 + $0x20] sm:$0xff]  ;;  %v87_v8 = vld [vmem:[%s1464_s1 + $0x28] sm:$0xff] }
   0x3   :  { %v657_v6 = vpack.c.bf16 %v85_v5, %v84_v2  ;;  %v660_v9 = vpack.c.bf16 %v87_v8, %v86_v7  ;;  %v88_v10 = vld [vmem:[%s1464_s1 + $0x30] sm:$0xff]  ;;  %v89_v11 = vld [vmem:[%s1464_s1 + $0x38] sm:$0xff]  ;;  %v19_v12 = vld [vmem:[%s1463_s0 + $0x8] sm:$0xff] }
   0x4   :  { %655 = vmatpush1.bf16.msra.mxu0 %v654_v4  ;;  %717 = vmatpush1.bf16.msra.mxu1 %v654_v4  ;;  %v663_v13 = vpack.c.bf16 %v89_v11, %v88_v10  ;;  %v90_v14 = vld [vmem:[%s1464_s1 + $0x40] sm:$0xff]  ;;  %v91_v15 = vld [vmem:[%s1464_s1 + $0x48] sm:$0xff]  ;;  %v92_v17 = vld [vmem:[%s1464_s1 + $0x50] sm:$0xff] }
   0x5   :  { %656 = vmatprep.subr.bf16.mxu0 %v788_v3  ;;  %702 = vmatprep.subr.bf16.mxu1 %v788_v3  ;;  %v666_v16 = vpack.c.bf16 %v91_v15, %v90_v14  ;;  %v93_v18 = vld [vmem:[%s1464_s1 + $0x58] sm:$0xff]  ;;  %v51_v19 = vld [vmem:[%s1463_s0 + $0x108] sm:$0xff]  ;;  %v94_v21 = vld [vmem:[%s1464_s1 + $0x60] sm:$0xff] }
   0x6   :  { %178 = vmatprep.mubr.f32.mxu0 %v19_v12  ;;  %258 = vmatprep.mubr.f32.mxu1 %v51_v19  ;;  %v669_v20 = vpack.c.bf16 %v93_v18, %v92_v17  ;;  %v95_v22 = vld [vmem:[%s1464_s1 + $0x68] sm:$0xff]  ;;  %v96_v24 = vld [vmem:[%s1464_s1 + $0x70] sm:$0xff]  ;;  %v97_v25 = vld [vmem:[%s1464_s1 + $0x78] sm:$0xff] }
   0x7   :  { %v672_v23 = vpack.c.bf16 %v95_v22, %v94_v21  ;;  %v675_v26 = vpack.c.bf16 %v97_v25, %v96_v24  ;;  %v98_v27 = vld [vmem:[%s1464_s1 + $0x80] sm:$0xff]  ;;  %v99_v28 = vld [vmem:[%s1464_s1 + $0x88] sm:$0xff]  ;;  %v100_v30 = vld [vmem:[%s1464_s1 + $0x90] sm:$0xff] }
   0x8   :  { %658 = vmatpush1.bf16.msra.mxu0 %v657_v6  ;;  %718 = vmatpush1.bf16.msra.mxu1 %v657_v6  ;;  %v678_v29 = vpack.c.bf16 %v99_v28, %v98_v27  ;;  %v101_v31 = vld [vmem:[%s1464_s1 + $0x98] sm:$0xff] }
   0x9   :  { %659 = vmatprep.subr.bf16.mxu0 %v788_v3  ;;  %703 = vmatprep.subr.bf16.mxu1 %v788_v3 }
   0xc   :  { %661 = vmatpush1.bf16.msra.mxu0 %v660_v9  ;;  %719 = vmatpush1.bf16.msra.mxu1 %v660_v9 }
   0xd   :  { %662 = vmatprep.subr.bf16.mxu0 %v788_v3  ;;  %704 = vmatprep.subr.bf16.mxu1 %v788_v3 }
  0x10   :  { %664 = vmatpush1.bf16.msra.mxu0 %v663_v13  ;;  %720 = vmatpush1.bf16.msra.mxu1 %v663_v13 }
  0x11   :  { %665 = vmatprep.subr.bf16.mxu0 %v788_v3  ;;  %705 = vmatprep.subr.bf16.mxu1 %v788_v3 }
  0x14   :  { %667 = vmatpush1.bf16.msra.mxu0 %v666_v16  ;;  %721 = vmatpush1.bf16.msra.mxu1 %v666_v16 }
  0x15   :  { %668 = vmatprep.subr.bf16.mxu0 %v788_v3  ;;  %706 = vmatprep.subr.bf16.mxu1 %v788_v3 }
  0x18   :  { %670 = vmatpush1.bf16.msra.mxu0 %v669_v20  ;;  %722 = vmatpush1.bf16.msra.mxu1 %v669_v20 }
  0x19   :  { %671 = vmatprep.subr.bf16.mxu0 %v788_v3  ;;  %707 = vmatprep.subr.bf16.mxu1 %v788_v3 }
  0x1c   :  { %673 = vmatpush1.bf16.msra.mxu0 %v672_v23  ;;  %723 = vmatpush1.bf16.msra.mxu1 %v672_v23 }
  0x1d   :  { %674 = vmatprep.subr.bf16.mxu0 %v788_v3  ;;  %708 = vmatprep.subr.bf16.mxu1 %v788_v3 }
  0x20   :  { %676 = vmatpush1.bf16.msra.mxu0 %v675_v26  ;;  %724 = vmatpush1.bf16.msra.mxu1 %v675_v26 }
  0x21   :  { %677 = vmatprep.subr.bf16.mxu0 %v788_v3  ;;  %709 = vmatprep.subr.bf16.mxu1 %v788_v3 }
  0x22   :  { %11 = vsyncpa [#allocation5], 0  ;;  %v681_v32 = vpack.c.bf16 %v101_v31, %v100_v30  ;;  %v102_v33 = vld [vmem:[%s1464_s1 + $0xa0] sm:$0xff]  ;;  %v103_v34 = vld [vmem:[%s1464_s1 + $0xa8] sm:$0xff]  ;;  %vm435_vm0 = vcmask 7168   ;;  %s790_s29 = smov [#allocation4]  }
  0x23   :  { %v684_v35 = vpack.c.bf16 %v103_v34, %v102_v33  ;;  %v104_v36 = vld [vmem:[%s1464_s1 + $0xb0] sm:$0xff]  ;;  %v105_v37 = vld [vmem:[%s1464_s1 + $0xb8] sm:$0xff]  ;;  %v106_v39 = vld [vmem:[%s1464_s1 + $0xc0] sm:$0xff]  ;;  %s641_s30 = sshll.u32 %s790_s29, 4  ;;  %s1430_s30 = int_to_ptr.vmem [resolvable:$true] %s641_s30 }
  0x24   :  { %679 = vmatpush1.bf16.msra.mxu0 %v678_v29  ;;  %725 = vmatpush1.bf16.msra.mxu1 %v678_v29  ;;  %v687_v38 = vpack.c.bf16 %v105_v37, %v104_v36  ;;  %v107_v40 = vld [vmem:[%s1464_s1 + $0xc8] sm:$0xff]  ;;  %v108_v42 = vld [vmem:[%s1464_s1 + $0xd0] sm:$0xff]  ;;  %v109_v43 = vld [vmem:[%s1464_s1 + $0xd8] sm:$0xff] }
  0x25   :  { %680 = vmatprep.subr.bf16.mxu0 %v788_v3  ;;  %710 = vmatprep.subr.bf16.mxu1 %v788_v3  ;;  %v690_v41 = vpack.c.bf16 %v107_v40, %v106_v39  ;;  %v693_v44 = vpack.c.bf16 %v109_v43, %v108_v42  ;;  %v110_v45 = vld [vmem:[%s1464_s1 + $0xe0] sm:$0xff]  ;;  %v111_v46 = vld [vmem:[%s1464_s1 + $0xe8] sm:$0xff]  ;;  %v112_v48 = vld [vmem:[%s1464_s1 + $0xf0] sm:$0xff] }
  0x26   :  { %v696_v47 = vpack.c.bf16 %v111_v46, %v110_v45  ;;  %v113_v49 = vld [vmem:[%s1464_s1 + $0xf8] sm:$0xff]  ;;  %v18_v51 = vld [vmem:[%s1463_s0] sm:$0xff]  ;;  %v20_v55 = vld [vmem:[%s1463_s0 + $0x10] sm:$0xff] }
  0x27   :  { %v699_v50 = vpack.c.bf16 %v113_v49, %v112_v48  ;;  %v50_v52 = vld [vmem:[%s1463_s0 + $0x100] sm:$0xff]  ;;  %v21_v53 = vld [vmem:[%s1463_s0 + $0x18] sm:$0xff]  ;;  %v52_v56 = vld [vmem:[%s1463_s0 + $0x110] sm:$0xff] }
  0x28   :  { %682 = vmatpush1.bf16.msra.mxu0 %v681_v32  ;;  %726 = vmatpush1.bf16.msra.mxu1 %v681_v32  ;;  %v53_v54 = vld [vmem:[%s1463_s0 + $0x118] sm:$0xff]  ;;  %v23_v57 = vld [vmem:[%s1463_s0 + $0x28] sm:$0xff]  ;;  %v22_v59 = vld [vmem:[%s1463_s0 + $0x20] sm:$0xff] }
  0x29   :  { %683 = vmatprep.subr.bf16.mxu0 %v788_v3  ;;  %711 = vmatprep.subr.bf16.mxu1 %v788_v3  ;;  %v55_v58 = vld [vmem:[%s1463_s0 + $0x128] sm:$0xff]  ;;  %v54_v60 = vld [vmem:[%s1463_s0 + $0x120] sm:$0xff]  ;;  %v25_v61 = vld [vmem:[%s1463_s0 + $0x38] sm:$0xff] }
  0x2a   :  { %v57_v62 = vld [vmem:[%s1463_s0 + $0x138] sm:$0xff]  ;;  %v24_v63 = vld [vmem:[%s1463_s0 + $0x30] sm:$0xff]  ;;  %v27_v1 = vld [vmem:[%s1463_s0 + $0x48] sm:$0xff] }
  0x2b   :  { %v56_v0 = vld [vmem:[%s1463_s0 + $0x130] sm:$0xff]  ;;  %v59_v2 = vld [vmem:[%s1463_s0 + $0x148] sm:$0xff]  ;;  %v58_v4 = vld [vmem:[%s1463_s0 + $0x140] sm:$0xff] }
  0x2c   :  { %685 = vmatpush1.bf16.msra.mxu0 %v684_v35  ;;  %727 = vmatpush1.bf16.msra.mxu1 %v684_v35  ;;  %v29_v5 = vld [vmem:[%s1463_s0 + $0x58] sm:$0xff]  ;;  %v28_v7 = vld [vmem:[%s1463_s0 + $0x50] sm:$0xff]  ;;  %v31_v9 = vld [vmem:[%s1463_s0 + $0x68] sm:$0xff] }
  0x2d   :  { %686 = vmatprep.subr.bf16.mxu0 %v788_v3  ;;  %712 = vmatprep.subr.bf16.mxu1 %v788_v3  ;;  %v61_v6 = vld [vmem:[%s1463_s0 + $0x158] sm:$0xff]  ;;  %v60_v8 = vld [vmem:[%s1463_s0 + $0x150] sm:$0xff]  ;;  %v63_v10 = vld [vmem:[%s1463_s0 + $0x168] sm:$0xff] }
  0x2e   :  { %v30_v11 = vld [vmem:[%s1463_s0 + $0x60] sm:$0xff]  ;;  %v33_v13 = vld [vmem:[%s1463_s0 + $0x78] sm:$0xff]  ;;  %v32_v15 = vld [vmem:[%s1463_s0 + $0x70] sm:$0xff] }
  0x2f   :  { %v62_v12 = vld [vmem:[%s1463_s0 + $0x160] sm:$0xff]  ;;  %v65_v14 = vld [vmem:[%s1463_s0 + $0x178] sm:$0xff]  ;;  %v64_v16 = vld [vmem:[%s1463_s0 + $0x170] sm:$0xff] }
  0x30   :  { %688 = vmatpush1.bf16.msra.mxu0 %v687_v38  ;;  %728 = vmatpush1.bf16.msra.mxu1 %v687_v38  ;;  %v35_v17 = vld [vmem:[%s1463_s0 + $0x88] sm:$0xff]  ;;  %v34_v19 = vld [vmem:[%s1463_s0 + $0x80] sm:$0xff]  ;;  %v37_v21 = vld [vmem:[%s1463_s0 + $0x98] sm:$0xff] }
  0x31   :  { %689 = vmatprep.subr.bf16.mxu0 %v788_v3  ;;  %713 = vmatprep.subr.bf16.mxu1 %v788_v3  ;;  %v67_v18 = vld [vmem:[%s1463_s0 + $0x188] sm:$0xff]  ;;  %v66_v20 = vld [vmem:[%s1463_s0 + $0x180] sm:$0xff]  ;;  %v69_v22 = vld [vmem:[%s1463_s0 + $0x198] sm:$0xff] }
  0x32   :  { %v36_v23 = vld [vmem:[%s1463_s0 + $0x90] sm:$0xff]  ;;  %v39_v25 = vld [vmem:[%s1463_s0 + $0xa8] sm:$0xff]  ;;  %v38_v27 = vld [vmem:[%s1463_s0 + $0xa0] sm:$0xff] }
  0x33   :  { %v68_v24 = vld [vmem:[%s1463_s0 + $0x190] sm:$0xff]  ;;  %v71_v26 = vld [vmem:[%s1463_s0 + $0x1a8] sm:$0xff]  ;;  %v70_v28 = vld [vmem:[%s1463_s0 + $0x1a0] sm:$0xff] }
  0x34   :  { %691 = vmatpush1.bf16.msra.mxu0 %v690_v41  ;;  %729 = vmatpush1.bf16.msra.mxu1 %v690_v41  ;;  %v41_v29 = vld [vmem:[%s1463_s0 + $0xb8] sm:$0xff]  ;;  %v40_v31 = vld [vmem:[%s1463_s0 + $0xb0] sm:$0xff]  ;;  %v43_v33 = vld [vmem:[%s1463_s0 + $0xc8] sm:$0xff] }
  0x35   :  { %692 = vmatprep.subr.bf16.mxu0 %v788_v3  ;;  %714 = vmatprep.subr.bf16.mxu1 %v788_v3  ;;  %v73_v30 = vld [vmem:[%s1463_s0 + $0x1b8] sm:$0xff]  ;;  %v72_v32 = vld [vmem:[%s1463_s0 + $0x1b0] sm:$0xff]  ;;  %v75_v34 = vld [vmem:[%s1463_s0 + $0x1c8] sm:$0xff] }
  0x36   :  { %v42_v35 = vld [vmem:[%s1463_s0 + $0xc0] sm:$0xff]  ;;  %v45_v37 = vld [vmem:[%s1463_s0 + $0xd8] sm:$0xff]  ;;  %v44_v39 = vld [vmem:[%s1463_s0 + $0xd0] sm:$0xff] }
  0x37   :  { %v74_v36 = vld [vmem:[%s1463_s0 + $0x1c0] sm:$0xff]  ;;  %v77_v38 = vld [vmem:[%s1463_s0 + $0x1d8] sm:$0xff]  ;;  %v76_v40 = vld [vmem:[%s1463_s0 + $0x1d0] sm:$0xff] }
  0x38   :  { %694 = vmatpush1.bf16.msra.mxu0 %v693_v44  ;;  %730 = vmatpush1.bf16.msra.mxu1 %v693_v44  ;;  %v47_v41 = vld [vmem:[%s1463_s0 + $0xe8] sm:$0xff]  ;;  %v46_v43 = vld [vmem:[%s1463_s0 + $0xe0] sm:$0xff]  ;;  %v49_v45 = vld [vmem:[%s1463_s0 + $0xf8] sm:$0xff] }
  0x39   :  { %695 = vmatprep.subr.bf16.mxu0 %v788_v3  ;;  %715 = vmatprep.subr.bf16.mxu1 %v788_v3  ;;  %v79_v42 = vld [vmem:[%s1463_s0 + $0x1e8] sm:$0xff]  ;;  %v78_v44 = vld [vmem:[%s1463_s0 + $0x1e0] sm:$0xff]  ;;  %v81_v46 = vld [vmem:[%s1463_s0 + $0x1f8] sm:$0xff] }
  0x3a   :  { %v80_v48 = vld [vmem:[%s1463_s0 + $0x1f0] sm:$0xff]  ;;  %v339_v49 = vld [vmem:[%s1465_s2] sm:$0xff] }
  0x3c   :  { %697 = vmatpush1.bf16.msra.mxu0 %v696_v47  ;;  %731 = vmatpush1.bf16.msra.mxu1 %v696_v47  ;;  %v48_v47 = vld [vmem:[%s1463_s0 + $0xf0] sm:$0xff] }
  0x3d   :  { %698 = vmatprep.subr.bf16.mxu0 %v788_v3  ;;  %716 = vmatprep.subr.bf16.mxu1 %v788_v3  ;;  %v26_v3 = vld [vmem:[%s1463_s0 + $0x40] sm:$0xff] }
  0x40   :  { %700 = vmatpush1.bf16.msra.mxu0 %v699_v50  ;;  %732 = vmatpush1.bf16.msra.mxu1 %v699_v50  ;;  %v340_v50 = vld [vmem:[%s1465_s2 + $0x8] sm:$0xff] }
  0x43   :  { %179 = vmatmul.mubr.f32.vlgmr.msra.gmra.mrb[0].mxu0 %v18_v51  ;;  %259 = vmatmul.mubr.f32.vlgmr.msra.gmra.mrb[0].mxu1 %v50_v52  ;;  %v518_v51 = vmul.f32 %v339_v49, %v339_v49  ;;  %v519_v52 = vmul.f32 %v340_v50, %v340_v50 }
  0x44   :  { %183 = vmatprep.mubr.f32.mxu0 %v21_v53  ;;  %263 = vmatprep.mubr.f32.mxu1 %v53_v54  ;;  %v341_v53 = vld [vmem:[%s1465_s2 + $0x10] sm:$0xff] }
  0x45   :  { %v550_v54 = vsel %vm435_vm0, %v518_v51, 0.0 }
  0x47   :  { %184 = vmatmul.mubr.f32.gmra.mrb[2].mxu0 %v20_v55  ;;  %264 = vmatmul.mubr.f32.gmra.mrb[2].mxu1 %v52_v56  ;;  %v551_v55 = vsel %vm435_vm0, %v519_v52, 0.0  ;;  %v520_v56 = vmul.f32 %v341_v53, %v341_v53 }
  0x48   :  { %188 = vmatprep.mubr.f32.mxu0 %v23_v57  ;;  %268 = vmatprep.mubr.f32.mxu1 %v55_v58  ;;  %v552_v57 = vadd.f32 %v551_v55, %v550_v54  ;;  %v342_v58 = vld [vmem:[%s1465_s2 + $0x18] sm:$0xff] }
  0x4b   :  { %189 = vmatmul.mubr.f32.gmra.mrb[4].mxu0 %v22_v59  ;;  %269 = vmatmul.mubr.f32.gmra.mrb[4].mxu1 %v54_v60  ;;  %v553_v59 = vsel %vm435_vm0, %v520_v56, 0.0  ;;  %v521_v60 = vmul.f32 %v342_v58, %v342_v58 }
  0x4c   :  { %193 = vmatprep.mubr.f32.mxu0 %v25_v61  ;;  %273 = vmatprep.mubr.f32.mxu1 %v57_v62  ;;  %v554_v61 = vadd.f32 %v553_v59, %v552_v57  ;;  %v1154_v62 = vld [vmem:[%s1465_s2 + $0x20] sm:$0xff] }
  0x4f   :  { %194 = vmatmul.mubr.f32.gmra.mrb[6].mxu0 %v24_v63  ;;  %274 = vmatmul.mubr.f32.gmra.mrb[6].mxu1 %v56_v0  ;;  %v555_v63 = vsel %vm435_vm0, %v521_v60, 0.0  ;;  %v522_v0 = vmul.f32 %v1154_v62, %v1154_v62 }
  0x50   :  { %198 = vmatprep.mubr.f32.mxu0 %v27_v1  ;;  %278 = vmatprep.mubr.f32.mxu1 %v59_v2  ;;  %v556_v1 = vadd.f32 %v555_v63, %v554_v61  ;;  %v1162_v2 = vld [vmem:[%s1465_s2 + $0x28] sm:$0xff]  ;;  %v1231_v63 = vld [vmem:[%s1465_s2 + $0x60] sm:$0xff] }
  0x53   :  { %199 = vmatmul.mubr.f32.gmra.mrb[8].mxu0 %v26_v3  ;;  %279 = vmatmul.mubr.f32.gmra.mrb[8].mxu1 %v58_v4  ;;  %v557_v3 = vsel %vm435_vm0, %v522_v0, 0.0  ;;  %v523_v4 = vmul.f32 %v1162_v2, %v1162_v2 }
  0x54   :  { %203 = vmatprep.mubr.f32.mxu0 %v29_v5  ;;  %283 = vmatprep.mubr.f32.mxu1 %v61_v6  ;;  %v558_v5 = vadd.f32 %v557_v3, %v556_v1  ;;  %v1170_v6 = vld [vmem:[%s1465_s2 + $0x30] sm:$0xff] }
  0x57   :  { %204 = vmatmul.mubr.f32.gmra.mrb[10].mxu0 %v28_v7  ;;  %284 = vmatmul.mubr.f32.gmra.mrb[10].mxu1 %v60_v8  ;;  %v559_v7 = vsel %vm435_vm0, %v523_v4, 0.0  ;;  %v524_v8 = vmul.f32 %v1170_v6, %v1170_v6  ;;  %v530_v4 = vmul.f32 %v1231_v63, %v1231_v63 }
  0x58   :  { %208 = vmatprep.mubr.f32.mxu0 %v31_v9  ;;  %288 = vmatprep.mubr.f32.mxu1 %v63_v10  ;;  %v560_v9 = vadd.f32 %v559_v7, %v558_v5  ;;  %v1178_v10 = vld [vmem:[%s1465_s2 + $0x38] sm:$0xff] }
  0x5b   :  { %209 = vmatmul.mubr.f32.gmra.mrb[12].mxu0 %v30_v11  ;;  %289 = vmatmul.mubr.f32.gmra.mrb[12].mxu1 %v62_v12  ;;  %v561_v11 = vsel %vm435_vm0, %v524_v8, 0.0  ;;  %v525_v12 = vmul.f32 %v1178_v10, %v1178_v10 }
  0x5c   :  { %213 = vmatprep.mubr.f32.mxu0 %v33_v13  ;;  %293 = vmatprep.mubr.f32.mxu1 %v65_v14  ;;  %v562_v14 = vadd.f32 %v561_v11, %v560_v9 }
  0x5f   :  { %214 = vmatmul.mubr.f32.gmra.mrb[14].mxu0 %v32_v15  ;;  %294 = vmatmul.mubr.f32.gmra.mrb[14].mxu1 %v64_v16  ;;  %v1188_v16 = vld [vmem:[%s1465_s2 + $0x40] sm:$0xff] }
  0x60   :  { %218 = vmatprep.mubr.f32.mxu0 %v35_v17  ;;  %298 = vmatprep.mubr.f32.mxu1 %v67_v18 }
  0x63   :  { %219 = vmatmul.mubr.f32.gmra.mrb[16].mxu0 %v34_v19  ;;  %299 = vmatmul.mubr.f32.gmra.mrb[16].mxu1 %v66_v20  ;;  %v563_v19 = vsel %vm435_vm0, %v525_v12, 0.0  ;;  %v526_v20 = vmul.f32 %v1188_v16, %v1188_v16 }
  0x64   :  { %223 = vmatprep.mubr.f32.mxu0 %v37_v21  ;;  %303 = vmatprep.mubr.f32.mxu1 %v69_v22  ;;  %v1196_v22 = vld [vmem:[%s1465_s2 + $0x48] sm:$0xff] }
  0x67   :  { %224 = vmatmul.mubr.f32.gmra.mrb[18].mxu0 %v36_v23  ;;  %304 = vmatmul.mubr.f32.gmra.mrb[18].mxu1 %v68_v24  ;;  %v564_v24 = vadd.f32 %v563_v19, %v562_v14 }
  0x68   :  { %228 = vmatprep.mubr.f32.mxu0 %v39_v25  ;;  %308 = vmatprep.mubr.f32.mxu1 %v71_v26  ;;  %v527_v26 = vmul.f32 %v1196_v22, %v1196_v22 }
  0x6b   :  { %229 = vmatmul.mubr.f32.gmra.mrb[20].mxu0 %v38_v27  ;;  %309 = vmatmul.mubr.f32.gmra.mrb[20].mxu1 %v70_v28 }
  0x6c   :  { %233 = vmatprep.mubr.f32.mxu0 %v41_v29  ;;  %313 = vmatprep.mubr.f32.mxu1 %v73_v30  ;;  %v565_v30 = vsel %vm435_vm0, %v526_v20, 0.0 }
  0x6f   :  { %234 = vmatmul.mubr.f32.gmra.mrb[22].mxu0 %v40_v31  ;;  %314 = vmatmul.mubr.f32.gmra.mrb[22].mxu1 %v72_v32 }
  0x70   :  { %238 = vmatprep.mubr.f32.mxu0 %v43_v33  ;;  %318 = vmatprep.mubr.f32.mxu1 %v75_v34  ;;  %v566_v34 = vadd.f32 %v565_v30, %v564_v24 }
  0x73   :  { %239 = vmatmul.mubr.f32.gmra.mrb[24].mxu0 %v42_v35  ;;  %319 = vmatmul.mubr.f32.gmra.mrb[24].mxu1 %v74_v36  ;;  %v567_v35 = vsel %vm435_vm0, %v527_v26, 0.0 }
  0x74   :  { %243 = vmatprep.mubr.f32.mxu0 %v45_v37  ;;  %323 = vmatprep.mubr.f32.mxu1 %v77_v38  ;;  %v1209_v37 = vld [vmem:[%s1465_s2 + $0x50] sm:$0xff] }
  0x77   :  { %244 = vmatmul.mubr.f32.gmra.mrb[26].mxu0 %v44_v39  ;;  %324 = vmatmul.mubr.f32.gmra.mrb[26].mxu1 %v76_v40 }
  0x78   :  { %248 = vmatprep.mubr.f32.mxu0 %v47_v41  ;;  %328 = vmatprep.mubr.f32.mxu1 %v79_v42  ;;  %v528_v42 = vmul.f32 %v1209_v37, %v1209_v37 }
  0x7b   :  { %249 = vmatmul.mubr.f32.gmra.mrb[28].mxu0 %v46_v43  ;;  %329 = vmatmul.mubr.f32.gmra.mrb[28].mxu1 %v78_v44 }
  0x7c   :  { %253 = vmatprep.mubr.f32.mxu0 %v49_v45  ;;  %333 = vmatprep.mubr.f32.mxu1 %v81_v46 }
  0x7f   :  { %254 = vmatmul.mubr.f32.gmra.mrb[30].mxu0 %v48_v47  ;;  %334 = vmatmul.mubr.f32.gmra.mrb[30].mxu1 %v80_v48  ;;  %v568_v47 = vadd.f32 %v567_v35, %v566_v34 }
 0x116   :  { %v180_v13 = vpop.f32.mrb[0].mxu0  ;;  %v1183_v15 = vpop.f32.mrb[0].mxu1 }
 0x117   :  { %v371_v17 = vsub.f32 %v339_v49, %v180_v13  ;;  %v182_v18 = vpop.f32.mrb[1].mxu0  ;;  %v262_v21 = vpop.f32.mrb[1].mxu1  ;;  %v1220_v49 = vld [vmem:[%s1465_s2 + $0x58] sm:$0xff]  ;;  %v1243_v13 = vld [vmem:[%s1465_s2 + $0x68] sm:$0xff] }
 0x118   :  { %v529_v54 = vmul.f32 %v1220_v49, %v1220_v49  ;;  %v573_v18 = vsel %vm435_vm0, %v530_v4, 0.0  ;;  %v531_v19 = vmul.f32 %v1243_v13, %v1243_v13 }
 0x119   :  { %v403_v27 = vmul.f32 %v371_v17, %v371_v17 }
 0x11a   :  { %v185_v23 = vpop.f32.mrb[2].mxu0  ;;  %v1198_v25 = vpop.f32.mrb[2].mxu1  ;;  %v571_v3 = vsel %vm435_vm0, %v529_v54, 0.0 }
 0x11b   :  { %v372_v28 = vsub.f32 %v340_v50, %v185_v23  ;;  %v187_v29 = vpop.f32.mrb[3].mxu0  ;;  %v267_v31 = vpop.f32.mrb[3].mxu1  ;;  %v436_v38 = vsel %vm435_vm0, %v403_v27, 0.0 }
 0x11c   :  { %v575_v31 = vsel %vm435_vm0, %v531_v19, 0.0 }
 0x11d   :  { %v404_v32 = vmul.f32 %v372_v28, %v372_v28  ;;  %v1255_v28 = vld [vmem:[%s1465_s2 + $0x70] sm:$0xff] }
 0x11e   :  { %v190_v33 = vpop.f32.mrb[4].mxu0  ;;  %v1204_v36 = vpop.f32.mrb[4].mxu1 }
 0x11f   :  { %v437_v39 = vsel %vm435_vm0, %v404_v32, 0.0  ;;  %v373_v40 = vsub.f32 %v341_v53, %v190_v33  ;;  %v192_v41 = vpop.f32.mrb[5].mxu0  ;;  %v272_v43 = vpop.f32.mrb[5].mxu1  ;;  %v569_v53 = vsel %vm435_vm0, %v528_v42, 0.0  ;;  %v532_v32 = vmul.f32 %v1255_v28, %v1255_v28 }
 0x120   :  { %v438_v44 = vadd.f32 %v437_v39, %v436_v38  ;;  %v570_v60 = vadd.f32 %v569_v53, %v568_v47  ;;  %v1267_v41 = vld [vmem:[%s1465_s2 + $0x78] sm:$0xff] }
 0x121   :  { %v405_v45 = vmul.f32 %v373_v40, %v373_v40 }
 0x122   :  { %v195_v46 = vpop.f32.mrb[6].mxu0  ;;  %v1215_v48 = vpop.f32.mrb[6].mxu1  ;;  %v572_v11 = vadd.f32 %v571_v3, %v570_v60 }
 0x123   :  { %v439_v50 = vsel %vm435_vm0, %v405_v45, 0.0  ;;  %v374_v51 = vsub.f32 %v342_v58, %v195_v46  ;;  %v197_v52 = vpop.f32.mrb[7].mxu0  ;;  %v277_v55 = vpop.f32.mrb[7].mxu1  ;;  %v533_v45 = vmul.f32 %v1267_v41, %v1267_v41 }
 0x124   :  { %v440_v56 = vadd.f32 %v439_v50, %v438_v44  ;;  %v574_v26 = vadd.f32 %v573_v18, %v572_v11  ;;  %v577_v44 = vsel %vm435_vm0, %v532_v32, 0.0  ;;  %v1301_v18 = vld [vmem:[%s1465_s2 + $0x90] sm:$0xff]  ;;  %v1313_v32 = vld [vmem:[%s1465_s2 + $0x98] sm:$0xff] }
 0x125   :  { %v406_v57 = vmul.f32 %v374_v51, %v374_v51  ;;  %v1277_v51 = vld [vmem:[%s1465_s2 + $0x80] sm:$0xff] }
 0x126   :  { %v200_v59 = vpop.f32.mrb[8].mxu0  ;;  %v1226_v61 = vpop.f32.mrb[8].mxu1  ;;  %v576_v39 = vadd.f32 %v575_v31, %v574_v26  ;;  %v534_v55 = vmul.f32 %v1277_v51, %v1277_v51 }
 0x127   :  { %v441_v58 = vsel %vm435_vm0, %v406_v57, 0.0  ;;  %v375_v0 = vsub.f32 %v1154_v62, %v200_v59  ;;  %v202_v1 = vpop.f32.mrb[9].mxu0  ;;  %v282_v5 = vpop.f32.mrb[9].mxu1  ;;  %v579_v59 = vsel %vm435_vm0, %v533_v45, 0.0 }
 0x128   :  { %v442_v7 = vadd.f32 %v441_v58, %v440_v56  ;;  %v578_v53 = vadd.f32 %v577_v44, %v576_v39  ;;  %v1289_v1 = vld [vmem:[%s1465_s2 + $0x88] sm:$0xff] }
 0x129   :  { %v407_v8 = vmul.f32 %v375_v0, %v375_v0 }
 0x12a   :  { %v205_v9 = vpop.f32.mrb[10].mxu0  ;;  %v1238_v12 = vpop.f32.mrb[10].mxu1  ;;  %v580_v4 = vadd.f32 %v579_v59, %v578_v53 }
 0x12b   :  { %v443_v62 = vsel %vm435_vm0, %v407_v8, 0.0  ;;  %v376_v14 = vsub.f32 %v1162_v2, %v205_v9  ;;  %v207_v17 = vpop.f32.mrb[11].mxu0  ;;  %v287_v20 = vpop.f32.mrb[11].mxu1 }
 0x12c   :  { %v444_v21 = vadd.f32 %v443_v62, %v442_v7  ;;  %v581_v7 = vsel %vm435_vm0, %v534_v55, 0.0 }
 0x12d   :  { %v408_v23 = vmul.f32 %v376_v14, %v376_v14  ;;  %v582_v20 = vadd.f32 %v581_v7, %v580_v4 }
 0x12e   :  { %v210_v24 = vpop.f32.mrb[12].mxu0  ;;  %v1250_v27 = vpop.f32.mrb[12].mxu1 }
 0x12f   :  { %v445_v2 = vsel %vm435_vm0, %v408_v23, 0.0  ;;  %v377_v29 = vsub.f32 %v1170_v6, %v210_v24  ;;  %v212_v30 = vpop.f32.mrb[13].mxu0  ;;  %v292_v33 = vpop.f32.mrb[13].mxu1 }
 0x130   :  { %v446_v34 = vadd.f32 %v445_v2, %v444_v21 }
 0x131   :  { %v409_v35 = vmul.f32 %v377_v29, %v377_v29 }
 0x132   :  { %v215_v38 = vpop.f32.mrb[14].mxu0  ;;  %v1262_v40 = vpop.f32.mrb[14].mxu1 }
 0x133   :  { %v447_v6 = vsel %vm435_vm0, %v409_v35, 0.0  ;;  %v378_v42 = vsub.f32 %v1178_v10, %v215_v38  ;;  %v217_v43 = vpop.f32.mrb[15].mxu0  ;;  %v297_v46 = vpop.f32.mrb[15].mxu1 }
 0x134   :  { %v448_v47 = vadd.f32 %v447_v6, %v446_v34  ;;  %v359_v46 = vld [vmem:[%s1465_s2 + $0xa0] sm:$0xff] }
 0x135   :  { %v410_v50 = vmul.f32 %v378_v42, %v378_v42  ;;  %v538_v55 = vmul.f32 %v359_v46, %v359_v46 }
 0x136   :  { %v220_v52 = vpop.f32.mrb[16].mxu0  ;;  %v1279_v54 = vpop.f32.mrb[16].mxu1 }
 0x137   :  { %v449_v10 = vsel %vm435_vm0, %v410_v50, 0.0  ;;  %v379_v56 = vsub.f32 %v1188_v16, %v220_v52  ;;  %v222_v57 = vpop.f32.mrb[17].mxu0  ;;  %v302_v60 = vpop.f32.mrb[17].mxu1  ;;  %v535_v16 = vmul.f32 %v1289_v1, %v1289_v1  ;;  %v589_v7 = vsel %vm435_vm0, %v538_v55, 0.0 }
 0x138   :  { %v450_v58 = vadd.f32 %v449_v10, %v448_v47 }
 0x139   :  { %v411_v0 = vmul.f32 %v379_v56, %v379_v56  ;;  %v583_v23 = vsel %vm435_vm0, %v535_v16, 0.0 }
 0x13a   :  { %v225_v3 = vpop.f32.mrb[18].mxu0  ;;  %v1291_v5 = vpop.f32.mrb[18].mxu1  ;;  %v584_v34 = vadd.f32 %v583_v23, %v582_v20 }
 0x13b   :  { %v451_v8 = vsel %vm435_vm0, %v411_v0, 0.0  ;;  %v380_v9 = vsub.f32 %v1196_v22, %v225_v3  ;;  %v227_v11 = vpop.f32.mrb[19].mxu0  ;;  %v307_v62 = vpop.f32.mrb[19].mxu1  ;;  %v536_v22 = vmul.f32 %v1301_v18, %v1301_v18 }
 0x13c   :  { %v452_v14 = vadd.f32 %v451_v8, %v450_v58  ;;  %v360_v58 = vld [vmem:[%s1465_s2 + $0xa8] sm:$0xff] }
 0x13d   :  { %v412_v17 = vmul.f32 %v380_v9, %v380_v9  ;;  %v585_v38 = vsel %vm435_vm0, %v536_v22, 0.0  ;;  %v539_v16 = vmul.f32 %v360_v58, %v360_v58 }
 0x13e   :  { %v230_v19 = vpop.f32.mrb[20].mxu0  ;;  %v1303_v21 = vpop.f32.mrb[20].mxu1  ;;  %v586_v50 = vadd.f32 %v585_v38, %v584_v34  ;;  %v362_v34 = vld [vmem:[%s1465_s2 + $0xb8] sm:$0xff] }
 0x13f   :  { %v453_v24 = vsel %vm435_vm0, %v412_v17, 0.0  ;;  %v381_v26 = vsub.f32 %v1209_v37, %v230_v19  ;;  %v232_v2 = vpop.f32.mrb[21].mxu0  ;;  %v312_v29 = vpop.f32.mrb[21].mxu1  ;;  %v537_v37 = vmul.f32 %v1313_v32, %v1313_v32  ;;  %v361_v17 = vld [vmem:[%s1465_s2 + $0xb0] sm:$0xff]  ;;  %v541_v38 = vmul.f32 %v362_v34, %v362_v34 }
 0x140   :  { %v454_v30 = vadd.f32 %v453_v24, %v452_v14  ;;  %v591_v24 = vsel %vm435_vm0, %v539_v16, 0.0 }
 0x141   :  { %v413_v31 = vmul.f32 %v381_v26, %v381_v26  ;;  %v587_v53 = vsel %vm435_vm0, %v537_v37, 0.0  ;;  %v540_v26 = vmul.f32 %v361_v17, %v361_v17 }
 0x142   :  { %v235_v33 = vpop.f32.mrb[22].mxu0  ;;  %v1315_v35 = vpop.f32.mrb[22].mxu1  ;;  %v588_v3 = vadd.f32 %v587_v53, %v586_v50  ;;  %v389_v50 = vsub.f32 %v1301_v18, %v1204_v36  ;;  %v391_v36 = vsub.f32 %v359_v46, %v1226_v61  ;;  %v364_v18 = vld [vmem:[%s1465_s2 + $0xc8] sm:$0xff]  ;;  %v393_v61 = vsub.f32 %v361_v17, %v1250_v27  ;;  %v366_v17 = vld [vmem:[%s1465_s2 + $0xd8] sm:$0xff] }
 0x143   :  { %v455_v39 = vsel %vm435_vm0, %v413_v31, 0.0  ;;  %v382_v6 = vsub.f32 %v1220_v49, %v235_v33  ;;  %v237_v42 = vpop.f32.mrb[23].mxu0  ;;  %v317_v43 = vpop.f32.mrb[23].mxu1  ;;  %v387_v31 = vsub.f32 %v1277_v51, %v1183_v15 }
 0x144   :  { %v456_v44 = vadd.f32 %v455_v39, %v454_v30  ;;  %v590_v20 = vadd.f32 %v589_v7, %v588_v3  ;;  %v388_v42 = vsub.f32 %v1289_v1, %v1198_v25  ;;  %v363_v25 = vld [vmem:[%s1465_s2 + $0xc0] sm:$0xff]  ;;  %v543_v7 = vmul.f32 %v364_v18, %v364_v18 }
 0x145   :  { %v414_v45 = vmul.f32 %v382_v6, %v382_v6  ;;  %v395_v27 = vsub.f32 %v363_v25, %v1279_v54 }
 0x146   :  { %v240_v47 = vpop.f32.mrb[24].mxu0  ;;  %v1325_v52 = vpop.f32.mrb[24].mxu1  ;;  %v592_v37 = vadd.f32 %v591_v24, %v590_v20  ;;  %v420_v55 = vmul.f32 %v388_v42, %v388_v42 }
 0x147   :  { %v457_v10 = vsel %vm435_vm0, %v414_v45, 0.0  ;;  %v383_v56 = vsub.f32 %v1231_v63, %v240_v47  ;;  %v242_v49 = vpop.f32.mrb[25].mxu0  ;;  %v322_v57 = vpop.f32.mrb[25].mxu1  ;;  %v419_v47 = vmul.f32 %v387_v31, %v387_v31 }
 0x148   :  { %v458_v59 = vadd.f32 %v457_v10, %v456_v44  ;;  %v595_v10 = vsel %vm435_vm0, %v541_v38, 0.0  ;;  %v542_v49 = vmul.f32 %v363_v25, %v363_v25  ;;  %v396_v38 = vsub.f32 %v364_v18, %v1291_v5 }
 0x149   :  { %v415_v60 = vmul.f32 %v383_v56, %v383_v56  ;;  %v390_v56 = vsub.f32 %v1313_v32, %v1215_v48  ;;  %v392_v48 = vsub.f32 %v360_v58, %v1238_v12  ;;  %v394_v12 = vsub.f32 %v362_v34, %v1262_v40 }
 0x14a   :  { %v245_v0 = vpop.f32.mrb[26].mxu0  ;;  %v1333_v4 = vpop.f32.mrb[26].mxu1  ;;  %v597_v32 = vsel %vm435_vm0, %v542_v49, 0.0  ;;  %v398_v5 = vsub.f32 %v366_v17, %v1315_v35  ;;  %v370_v35 = vld [vmem:[%s1465_s2 + $0xf8] sm:$0xff] }
 0x14b   :  { %v459_v8 = vsel %vm435_vm0, %v415_v60, 0.0  ;;  %v384_v9 = vsub.f32 %v1243_v13, %v245_v0  ;;  %v247_v63 = vpop.f32.mrb[27].mxu0  ;;  %v327_v11 = vpop.f32.mrb[27].mxu1  ;;  %v421_v60 = vmul.f32 %v389_v50, %v389_v50  ;;  %v422_v16 = vmul.f32 %v390_v56, %v390_v56  ;;  %v368_v50 = vld [vmem:[%s1465_s2 + $0xe8] sm:$0xff]  ;;  %v369_v56 = vld [vmem:[%s1465_s2 + $0xf0] sm:$0xff] }
 0x14c   :  { %v460_v62 = vadd.f32 %v459_v8, %v458_v59  ;;  %v467_v59 = vsel %vm435_vm0, %v419_v47, 0.0  ;;  %v469_v8 = vsel %vm435_vm0, %v420_v55, 0.0  ;;  %v423_v11 = vmul.f32 %v391_v36, %v391_v36 }
 0x14d   :  { %v416_v14 = vmul.f32 %v384_v9, %v384_v9  ;;  %v471_v63 = vsel %vm435_vm0, %v421_v60, 0.0  ;;  %v473_v20 = vsel %vm435_vm0, %v422_v16, 0.0  ;;  %v424_v24 = vmul.f32 %v392_v48, %v392_v48 }
 0x14e   :  { %v250_v19 = vpop.f32.mrb[28].mxu0  ;;  %v1341_v23 = vpop.f32.mrb[28].mxu1  ;;  %v547_v55 = vmul.f32 %v368_v50, %v368_v50  ;;  %v430_v49 = vmul.f32 %v398_v5, %v398_v5 }
 0x14f   :  { %v461_v22 = vsel %vm435_vm0, %v416_v14, 0.0  ;;  %v385_v2 = vsub.f32 %v1255_v28, %v250_v19  ;;  %v252_v13 = vpop.f32.mrb[29].mxu0  ;;  %v332_v29 = vpop.f32.mrb[29].mxu1  ;;  %v593_v28 = vsel %vm435_vm0, %v540_v26, 0.0  ;;  %v599_v14 = vsel %vm435_vm0, %v543_v7, 0.0  ;;  %v365_v19 = vld [vmem:[%s1465_s2 + $0xd0] sm:$0xff] }
 0x150   :  { %v462_v30 = vadd.f32 %v461_v22, %v460_v62  ;;  %v594_v1 = vadd.f32 %v593_v28, %v592_v37  ;;  %v544_v58 = vmul.f32 %v365_v19, %v365_v19  ;;  %v475_v26 = vsel %vm435_vm0, %v423_v11, 0.0 }
 0x151   :  { %v417_v33 = vmul.f32 %v385_v2, %v385_v2  ;;  %v425_v2 = vmul.f32 %v393_v61, %v393_v61  ;;  %v477_v31 = vsel %vm435_vm0, %v424_v24, 0.0  ;;  %v427_v37 = vmul.f32 %v395_v27, %v395_v27 }
 0x152   :  { %v255_v39 = vpop.f32.mrb[30].mxu0  ;;  %v1351_v6 = vpop.f32.mrb[30].mxu1  ;;  %v596_v3 = vadd.f32 %v595_v10, %v594_v1  ;;  %v601_v40 = vsel %vm435_vm0, %v544_v58, 0.0  ;;  %v397_v54 = vsub.f32 %v365_v19, %v1303_v21  ;;  %v401_v18 = vsub.f32 %v369_v56, %v1341_v23 }
 0x153   :  { %v463_v43 = vsel %vm435_vm0, %v417_v33, 0.0  ;;  %v386_v44 = vsub.f32 %v1267_v41, %v255_v39  ;;  %v257_v15 = vpop.f32.mrb[31].mxu0  ;;  %v337_v51 = vpop.f32.mrb[31].mxu1  ;;  %v426_v33 = vmul.f32 %v394_v12, %v394_v12  ;;  %v479_v39 = vsel %vm435_vm0, %v425_v2, 0.0 }
 0x154   :  { %v464_v45 = vadd.f32 %v463_v43, %v462_v30  ;;  %v598_v62 = vadd.f32 %v597_v32, %v596_v3  ;;  %v545_v30 = vmul.f32 %v366_v17, %v366_v17  ;;  %v428_v51 = vmul.f32 %v396_v38, %v396_v38 }
 0x155   :  { %v418_v53 = vmul.f32 %v386_v44, %v386_v44  ;;  %v367_v44 = vld [vmem:[%s1465_s2 + $0xe0] sm:$0xff]  ;;  %v481_v15 = vsel %vm435_vm0, %v426_v33, 0.0  ;;  %v483_v21 = vsel %vm435_vm0, %v427_v37, 0.0  ;;  %v607_v48 = vsel %vm435_vm0, %v547_v55, 0.0  ;;  %s789_s2 = smov [#allocation2]  }
 0x156   :  { %v600_v29 = vadd.f32 %v599_v14, %v598_v62  ;;  %v603_v43 = vsel %vm435_vm0, %v545_v30, 0.0  ;;  %v399_v10 = vsub.f32 %v367_v44, %v1325_v52  ;;  %v548_v32 = vmul.f32 %v369_v56, %v369_v56  ;;  %s631_s27 = sshll.u32 %s789_s2, 4  ;;  %s632_s27 = int_to_ptr.vmem [resolvable:$true] %s631_s27 }
 0x157   :  { %v465_v41 = vsel %vm435_vm0, %v418_v53, 0.0  ;;  %v429_v53 = vmul.f32 %v397_v54, %v397_v54  ;;  %v549_v23 = vmul.f32 %v370_v35, %v370_v35  ;;  %s740_s6 = scalar_lea.vmem %s632_s27, 128  ;;  %p745_p1 = scmp.lt.s32.totalorder %s632_s27, %s632_s27 }
 0x158   :  { %v466_v57 = vadd.f32 %v465_v41, %v464_v45  ;;  %v602_v28 = vadd.f32 %v601_v40, %v600_v29  ;;  %v546_v45 = vmul.f32 %v367_v44, %v367_v44  ;;  %v485_v41 = vsel %vm435_vm0, %v428_v51, 0.0  ;;  %p741_p0 = scmp.ne.s32.totalorder %s632_s27, %s740_s6  ;;  %p746_p2 = scmp.lt.s32.totalorder %s740_s6, %s740_s6 }
 0x159   :  { %v487_v52 = vsel %vm435_vm0, %v429_v53, 0.0  ;;  %v431_v36 = vmul.f32 %v399_v10, %v399_v10  ;;  %v611_v58 = vsel %vm435_vm0, %v549_v23, 0.0 }
 0x15a   :  { %v468_v0 = vadd.f32 %v467_v59, %v466_v57  ;;  %v604_v1 = vadd.f32 %v603_v43, %v602_v28  ;;  %v605_v57 = vsel %vm435_vm0, %v546_v45, 0.0  ;;  %v400_v59 = vsub.f32 %v368_v50, %v1333_v4  ;;  %p747_p3 = por %p746_p2, %p745_p1 }
 0x15b   :  { %v433_v4 = vmul.f32 %v401_v18, %v401_v18 }
 0x15c   :  { %v470_v9 = vadd.f32 %v469_v8, %v468_v0  ;;  %v402_v0 = vsub.f32 %v370_v35, %v1351_v6  ;;  %v606_v7 = vadd.f32 %v605_v57, %v604_v1  ;;  %v489_v8 = vsel %vm435_vm0, %v430_v49, 0.0  ;;  %p748_p4 = pnand %p747_p3, %p741_p0 }
 0x15d   :  { %v432_v16 = vmul.f32 %v400_v59, %v400_v59  ;;  %v609_v6 = vsel %vm435_vm0, %v548_v32, 0.0  ;;  %v495_v19 = vsel %vm435_vm0, %v433_v4, 0.0 }
 0x15e   :  { %v472_v46 = vadd.f32 %v471_v63, %v470_v9  ;;  %v491_v63 = vsel %vm435_vm0, %v431_v36, 0.0  ;;  %v434_v11 = vmul.f32 %v402_v0, %v402_v0 }
 0x15f   :  { %v493_v62 = vsel %vm435_vm0, %v432_v16, 0.0 }
 0x160   :  { %v474_v22 = vadd.f32 %v473_v20, %v472_v46  ;;  %v608_v46 = vadd.f32 %v607_v48, %v606_v7  ;;  %v497_v20 = vsel %vm435_vm0, %v434_v11, 0.0 }
 0x162   :  { %v476_v13 = vadd.f32 %v475_v26, %v474_v22  ;;  %v610_v12 = vadd.f32 %v609_v6, %v608_v46 }
 0x164   :  { %v478_v34 = vadd.f32 %v477_v31, %v476_v13  ;;  %v612_v26 = vadd.f32 %v611_v58, %v610_v12 }
 0x166   :  { %v480_v42 = vadd.f32 %v479_v39, %v478_v34 }
 0x168   :  { %v482_v47 = vadd.f32 %v481_v15, %v480_v42  ;;  %v508_v42 = vlaneseq }
 0x16a   :  { %v484_v25 = vadd.f32 %v483_v21, %v482_v47  ;;  %v509_v28 = vshrl.u32 %v508_v42, 7  ;;  %v511_v43 = vand.u32 127, %v508_v42 }
 0x16c   :  { %v486_v60 = vadd.f32 %v485_v41, %v484_v25  ;;  %vm512_vm1 = vcmp.eq.s32.totalorder %v509_v28, 0  ;;  %vm513_vm2 = vcmp.eq.s32.totalorder %v511_v43, 0 }
 0x16d   :  { %vm1424_vm3 = vmand %vm512_vm1, %vm513_vm2 }
 0x16e   :  { %v488_v3 = vadd.f32 %v487_v52, %v486_v60 }
 0x170   :  { %v490_v9 = vadd.f32 %v489_v8, %v488_v3 }
 0x172   :  { %v492_v61 = vadd.f32 %v491_v63, %v490_v9 }
 0x174   :  { %v494_v14 = vadd.f32 %v493_v62, %v492_v61 }
 0x176   :  { %v496_v24 = vadd.f32 %v495_v19, %v494_v14 }
 0x178   :  { %v498_v22 = vadd.f32 %v497_v20, %v496_v24 }
 0x17a   :  { %499 = vadd.xlane.f32.xlu0 %v498_v22 }
 0x17e   :  { %613 = vadd.xlane.f32.xlu0 %v612_v26 }
 0x207   :  { %v500_v2 = vpop.xlane.xlu0 %499 }
 0x208   :  { %v501_v27 = vrot.slane %v500_v2, 4 }
 0x20a   :  { %v502_v17 = vadd.f32 %v501_v27, %v500_v2 }
 0x20b   :  { %v614_v13 = vpop.xlane.xlu0 %613 }
 0x20c   :  { %v503_v29 = vrot.slane %v502_v17, 2  ;;  %v615_v30 = vrot.slane %v614_v13, 4 }
 0x20e   :  { %v616_v31 = vadd.f32 %v615_v30, %v614_v13  ;;  %v504_v33 = vadd.f32 %v503_v29, %v502_v17 }
 0x210   :  { %v617_v38 = vrot.slane %v616_v31, 2  ;;  %v505_v40 = vrot.slane %v504_v33, 1 }
 0x212   :  { %v618_v34 = vadd.f32 %v617_v38, %v616_v31  ;;  %v506_v39 = vadd.f32 %v505_v40, %v504_v33 }
 0x214   :  { %733 = vpush %v506_v39  ;;  %v619_v37 = vrot.slane %v618_v34, 1 }
 0x216   :  { %v620_v54 = vadd.f32 %v619_v37, %v618_v34 }
 0x218   :  { %735 = vpush %v620_v54 }
 0x245   :  { %s734_s28 = spop %733 }
 0x246   :  { %v515_v15 = vstv %s734_s28 }
 0x247   :  { %v516_v51 = vsel %vm1424_vm3, %v515_v15, 0.0 }
 0x248   :  { %517 = vst [vmem:[#allocation2] sm:$0xff] %v516_v51 }
 0x249   :  { %s736_s5 = spop %735 }
 0x24a   :  { %v622_v5 = vstv %s736_s5 }
 0x24b   :  { %751 = shalt.err (!%p748_p4)
}
 0x24c   :  { %s752_s1 = scalar_lea.hbm %s1466_s3, 128 }
 0x24d   :  { %p753_p5 = scmp.ne.s32.totalorder %s1466_s3, %s752_s1  ;;  %p756_p6 = scmp.lt.u32.totalorder %s752_s1, %s1466_s3 }
 0x24f   :  { %p758_p7 = pnand %p756_p6, %p753_p5 }
 0x251   :  { %761 = shalt.err (!%p758_p7)
}
 0x252   :  { %634 = dma.vmem_to_hbm [thread:$0]  %s632_s27, 128, %s1466_s3, [#allocation3]   ;;  %v623_v45 = vsel %vm1424_vm3, %v622_v5, 0.0 }
 0x253   :  { %624 = vst [vmem:[#allocation4] sm:$0xff] %v623_v45  ;;  %s762_s15 = scalar_lea.vmem %s1430_s30, 128  ;;  %p767_p9 = scmp.lt.s32.totalorder %s1430_s30, %s1430_s30 }
 0x254   :  { %p763_p8 = scmp.ne.s32.totalorder %s1430_s30, %s762_s15  ;;  %p768_p10 = scmp.lt.s32.totalorder %s762_s15, %s762_s15 }
 0x256   :  { %p769_p11 = por %p768_p10, %p767_p9 }
 0x258   :  { %p770_p12 = pnand %p769_p11, %p763_p8 }
 0x25a   :  { %773 = shalt.err (!%p770_p12)
}
 0x25b   :  { %s774_s18 = scalar_lea.hbm %s1467_s4, 128 }
 0x25c   :  { %p775_p13 = scmp.ne.s32.totalorder %s1467_s4, %s774_s18  ;;  %p778_p0 = scmp.lt.u32.totalorder %s774_s18, %s1467_s4 }
 0x25e   :  { %p780_p1 = pnand %p778_p0, %p775_p13 }
 0x260   :  { %783 = shalt.err (!%p780_p1)
}
 0x261   :  { %644 = dma.vmem_to_hbm [thread:$0]  %s1430_s30, 128, %s1467_s4, [#allocation5]  }
 0x262   :  { %784 = dma.done.wait [#allocation3], 128  }
 0x263   :  { %785 = vsyncadd [#allocation3], 4294967168 }
 0x264   :  { %786 = dma.done.wait [#allocation5], 128  }
 0x265   :  { %787 = vsyncadd [#allocation5], 4294967168 }
 0x266   :  { %651 = vsyncpa [#allocation3], 1 }
 0x267   :  { %652 = vsyncpa [#allocation5], 1 }

</bundles_post_ra>
